<compile_context>
chip_gen: v6e
topology: v6e:2x2x1
jax: 0.10.0
libtpu: 0.0.40
codegen_flags: <defaults>
</compile_context>

<pallas_src>
import functools

import jax
import jax.numpy as jnp
from jax.experimental import pallas as pl
from jax.experimental.pallas import tpu as pltpu


_BT_ALIGN = 16                      # sublane alignment (covers bf16 packing)
_VMEM_BUDGET = 24 * 1024 * 1024     # per-step tile budget (fits v7x 32 MiB scoped)
_VMEM_LIMIT = 32 * 1024 * 1024      # explicit scoped-VMEM limit for the compiler


def _round_up(x: int, m: int) -> int:
    return ((x + m - 1) // m) * m


def _cdiv(a: int, b: int) -> int:
    return (a + b - 1) // b


def _fib_kan_kernel(x_ref, w_ref, b_ref, o_ref, *, degree: int, matmul_dtype):
    """FibKAN tile in natural (batch-major) layout.

    x_ref : (bt, input_dim)             -- flattened input tile (original dtype)
    w_ref : ((degree-1)*I, output_dim)  -- fused coeffs for d = 2..degree (VMEM resident)
    b_ref : (1, output_dim)             -- bias from the d = 1 (Fib_1 == 1) term
    o_ref : (bt, output_dim)            -- output tile
    """
    x = jnp.tanh(x_ref[...].astype(jnp.float32))          # (bt, I), f32 elementwise

    # Fibonacci recurrence: Fib_0 = 0, Fib_1 = 1, Fib_d = x*Fib_{d-1} + Fib_{d-2}.
    # Recurrence runs in f32; each produced feature is cast straight to the
    # MXU operand dtype so the concat materializes the matmul operand once.
    fib_prev = jnp.zeros_like(x)                           # Fib_0
    fib_cur = jnp.ones_like(x)                             # Fib_1
    feats = []
    for _ in range(2, degree + 1):                         # small static unroll
        fib_next = x * fib_cur + fib_prev
        fib_prev, fib_cur = fib_cur, fib_next
        feats.append(fib_next.astype(matmul_dtype))

    f = jnp.concatenate(feats, axis=-1)                    # (bt, (degree-1)*I)

    # Single fused MXU contraction over (degree, input_dim), f32 accumulation.
    # TODO(synk): if output_dim * fused_k grows large, add an output_dim grid
    # axis (parallel) so only a weight slab is VMEM-resident, and pad/tile
    # O / fused_k toward 128/256 multiples for MXU occupancy.
    acc = jnp.dot(f, w_ref[...], preferred_element_type=jnp.float32)  # (bt, O)
    acc = acc + b_ref[...].astype(jnp.float32)             # broadcast bias over rows

    o_ref[...] = acc.astype(o_ref.dtype)


def _pick_batch_tile(batch, batch_tile, input_dim, output_dim, fused_k,
                     x_bytes, out_bytes, mm_bytes):
    """Largest row tile fitting the VMEM budget, >= 2 grid steps when possible."""
    per_row = (2 * input_dim * x_bytes          # double-buffered input block
               + 2 * output_dim * out_bytes     # double-buffered output block
               + fused_k * mm_bytes             # fused MXU feature operand
               + 4 * input_dim * 4)             # f32 tanh + recurrence temporaries
    resident = fused_k * output_dim * mm_bytes + output_dim * 4   # weights + bias
    max_rows = max(_BT_ALIGN, (_VMEM_BUDGET - resident) // per_row)

    bt = min(batch_tile, max_rows, _round_up(batch, _BT_ALIGN))
    bt = max(_BT_ALIGN, (bt // _BT_ALIGN) * _BT_ALIGN)

    # v7x megacore: make sure the 'parallel' grid axis has >= 2 steps so both
    # TensorCores get work (no-op for tiny batches).
    if _cdiv(batch, bt) < 2 and batch > _BT_ALIGN:
        bt = max(_BT_ALIGN, _round_up(_cdiv(batch, 2), _BT_ALIGN))
    return bt


def fibonacci_kan_layer(x, fib_coeffs, *, degree=None, batch_tile=4096,
                        matmul_dtype=jnp.bfloat16, out_dtype=None):
    """FibonacciKANLayer forward.

    x           : any shape; flattened to (-1, input_dim) like the PyTorch module.
    fib_coeffs  : (input_dim, output_dim, degree+1)   [PyTorch parameter layout]
    matmul_dtype: MXU operand dtype.  bf16 is the fast path on every TPU
                  generation (f32 operands force multi-pass MXU emulation);
                  accumulation is always f32.
    out_dtype   : output dtype; defaults to promote(x.dtype, coeff dtype).
    Returns (batch, output_dim).
    """
    input_dim, output_dim, deg_p1 = fib_coeffs.shape
    if degree is None:
        degree = deg_p1 - 1
    assert deg_p1 == degree + 1

    x2 = x.reshape(-1, input_dim)                # keep HBM dtype; kernel upcasts
    batch = x2.shape[0]
    if out_dtype is None:
        out_dtype = jnp.result_type(x2.dtype, fib_coeffs.dtype)

    # d = 0 term is identically zero.
    if degree == 0:
        return jnp.zeros((batch, output_dim), out_dtype)

    # d = 1 term: Fib_1 == 1  ->  pure bias = sum_i C[i, :, 1].
    bias = jnp.sum(fib_coeffs[:, :, 1].astype(jnp.float32), axis=0)     # (O,)
    if degree == 1:
        return jnp.broadcast_to(bias[None, :].astype(out_dtype),
                                (batch, output_dim))

    # Fused weights for d = 2..degree:  W[(d-2)*I + i, o] = C[i, o, d].
    fused_k = (degree - 1) * input_dim
    w = jnp.transpose(fib_coeffs[:, :, 2:].astype(jnp.float32), (2, 0, 1))
    w = w.reshape(fused_k, output_dim).astype(matmul_dtype)
    bias_row = bias.reshape(1, output_dim)                               # f32

    bt = _pick_batch_tile(
        batch, batch_tile, input_dim, output_dim, fused_k,
        jnp.dtype(x2.dtype).itemsize, jnp.dtype(out_dtype).itemsize,
        jnp.dtype(matmul_dtype).itemsize)
    padded_batch = _round_up(batch, bt)
    pad = padded_batch - batch
    x2p = jnp.pad(x2, ((0, pad), (0, 0))) if pad else x2   # ragged batches only

    kernel = functools.partial(_fib_kan_kernel, degree=degree,
                               matmul_dtype=matmul_dtype)

    out = pl.pallas_call(
        kernel,
        out_shape=jax.ShapeDtypeStruct((padded_batch, output_dim), out_dtype),
        grid_spec=pltpu.PrefetchScalarGridSpec(
            num_scalar_prefetch=0,
            grid=(padded_batch // bt,),
            in_specs=[
                pl.BlockSpec((bt, input_dim), lambda i: (i, 0)),
                # Small constant operands: whole-array VMEM residents,
                # fetched once, never double-buffered.
                pl.BlockSpec(memory_space=pltpu.MemorySpace.VMEM),
                pl.BlockSpec(memory_space=pltpu.MemorySpace.VMEM),
            ],
            out_specs=pl.BlockSpec((bt, output_dim), lambda i: (i, 0)),
        ),
        compiler_params=pltpu.CompilerParams(
            dimension_semantics=("parallel",),
            vmem_limit_bytes=_VMEM_LIMIT),
    )(x2p, w, bias_row)

    # Padded rows are garbage-free but meaningless; keep this slice.
    return out[:batch] if pad else out


def reference_fib_kan(x, fib_coeffs, *, input_dim, degree):
    """Pure-JAX reference mirroring the PyTorch forward."""
    x2 = jnp.tanh(x.reshape(-1, input_dim).astype(jnp.float32))
    B = x2.shape[0]
    fibs = [jnp.zeros((B, input_dim), jnp.float32)]
    if degree > 0:
        fibs.append(jnp.ones((B, input_dim), jnp.float32))
    for _ in range(2, degree + 1):
        fibs.append(x2 * fibs[-1] + fibs[-2])
    fib = jnp.stack(fibs, axis=-1)                          # (B, I, D+1)
    return jnp.einsum('bid,iod->bo', fib, fib_coeffs.astype(jnp.float32))


if __name__ == "__main__":
    input_dim = 16
    output_dim = 32
    degree = 5

    key = jax.random.PRNGKey(0)
    kx, kc, kx2 = jax.random.split(key, 3)

    # Example input: (2, 4, 16, 16) -> flattened batch = 2*4*16*16/16 = 128
    x = jax.random.normal(kx, (2, 4, 16, 16), dtype=jnp.float32)

    # Deterministic "nn.init.normal_" equivalent.
    std = 1.0 / (input_dim * (degree + 1))
    fib_coeffs = std * jax.random.normal(
        kc, (input_dim, output_dim, degree + 1), dtype=jnp.float32)

    y_ref = reference_fib_kan(x, fib_coeffs, input_dim=input_dim, degree=degree)

    # Default path: bf16 MXU operands, f32 elementwise + accumulation.
    y = jax.block_until_ready(
        fibonacci_kan_layer(x, fib_coeffs, degree=degree))
    assert y.shape == (128, output_dim)
    assert jnp.allclose(y, y_ref, atol=1e-2, rtol=5e-2), \
        "bf16-matmul path mismatch vs reference"

    # Full-f32 MXU path, tight numerical check.
    y_f32 = jax.block_until_ready(
        fibonacci_kan_layer(x, fib_coeffs, degree=degree,
                            matmul_dtype=jnp.float32))
    assert jnp.allclose(y_f32, y_ref, atol=1e-5, rtol=1e-4), \
        "f32 mismatch vs reference"

    # Ragged flattened batch (150 rows) exercises the padding / slicing path.
    x_odd = jax.random.normal(kx2, (150, input_dim), dtype=jnp.float32)
    y_odd = jax.block_until_ready(
        fibonacci_kan_layer(x_odd, fib_coeffs, degree=degree,
                            matmul_dtype=jnp.float32))
    y_odd_ref = reference_fib_kan(x_odd, fib_coeffs,
                                  input_dim=input_dim, degree=degree)
    assert y_odd.shape == (150, output_dim)
    assert jnp.allclose(y_odd, y_odd_ref, atol=1e-5, rtol=1e-4), \
        "ragged-batch mismatch vs reference"

    # bf16 activations stay bf16 through HBM (half the input DMA bytes).
    x_bf16 = x.astype(jnp.bfloat16)
    y_bf16_in = jax.block_until_ready(
        fibonacci_kan_layer(x_bf16, fib_coeffs, degree=degree))
    y_bf16_ref = reference_fib_kan(x_bf16.astype(jnp.float32), fib_coeffs,
                                   input_dim=input_dim, degree=degree)
    assert jnp.allclose(y_bf16_in, y_bf16_ref, atol=1e-2, rtol=5e-2), \
        "bf16-activation path mismatch vs reference"

    print("KERNEL_OK")
</pallas_src>

<mosaic_0001>
module attributes {stable_mosaic.version = 11 : i64} {
  func.func @_fib_kan_kernel(%arg0: i32, %arg1: memref<64x16xf32, #tpu.memory_space<vmem>>, %arg2: memref<64x32xbf16, #tpu.memory_space<vmem>>, %arg3: memref<1x32xf32, #tpu.memory_space<vmem>>, %arg4: memref<64x32xf32, #tpu.memory_space<vmem>>) attributes {dimension_semantics = [#tpu.dimension_semantics<parallel>], iteration_bounds = array<i64: 2>, scalar_prefetch = 0 : i64, scratch_operands = 0 : i64, tpu.core_type = #tpu.core_type<tc>, window_params = [{transform_indices = @transform_0, window_bounds = array<i64: 64, 16>}, {pipeline_mode = #tpu.pipeline_mode<synchronous>, transform_indices = @transform_1, window_bounds = array<i64: 64, 32>}, {pipeline_mode = #tpu.pipeline_mode<synchronous>, transform_indices = @transform_2, window_bounds = array<i64: 1, 32>}, {transform_indices = @transform_3, window_bounds = array<i64: 64, 32>}]} {
    %c0 = arith.constant 0 : index
    %c0_0 = arith.constant 0 : index
    %0 = vector.load %arg1[%c0, %c0_0] : memref<64x16xf32, #tpu.memory_space<vmem>>, vector<64x16xf32>
    %1 = math.tanh %0 : vector<64x16xf32>
    %cst = arith.constant 0.000000e+00 : f32
    %2 = vector.broadcast %cst : f32 to vector<64x16xf32>
    %cst_1 = arith.constant 1.000000e+00 : f32
    %3 = vector.broadcast %cst_1 : f32 to vector<64x16xf32>
    %4 = arith.mulf %1, %3 : vector<64x16xf32>
    %5 = arith.addf %4, %2 : vector<64x16xf32>
    %6 = arith.truncf %5 : vector<64x16xf32> to vector<64x16xbf16>
    %7 = arith.mulf %1, %5 : vector<64x16xf32>
    %8 = arith.addf %7, %3 : vector<64x16xf32>
    %9 = arith.truncf %8 : vector<64x16xf32> to vector<64x16xbf16>
    %10 = arith.mulf %1, %8 : vector<64x16xf32>
    %11 = arith.addf %10, %5 : vector<64x16xf32>
    %12 = arith.truncf %11 : vector<64x16xf32> to vector<64x16xbf16>
    %13 = arith.mulf %1, %11 : vector<64x16xf32>
    %14 = arith.addf %13, %8 : vector<64x16xf32>
    %15 = arith.truncf %14 : vector<64x16xf32> to vector<64x16xbf16>
    %16 = tpu.concatenate %6, %9, %12, %15 in 1 : vector<64x16xbf16>, vector<64x16xbf16>, vector<64x16xbf16>, vector<64x16xbf16> -> vector<64x64xbf16>
    %c0_2 = arith.constant 0 : index
    %c0_3 = arith.constant 0 : index
    %17 = vector.load %arg2[%c0_2, %c0_3] : memref<64x32xbf16, #tpu.memory_space<vmem>>, vector<64x32xbf16>
    %cst_4 = arith.constant dense<0.000000e+00> : vector<64x32xf32>
    %18 = tpu.matmul %16, %17, %cst_4 {dimension_numbers = #tpu.dot_dimension_numbers<[1], [0], [0], [1], [0, 0, 1, 1], [], []>} : vector<64x64xbf16>, vector<64x32xbf16>, vector<64x32xf32> -> vector<64x32xf32>
    %c0_5 = arith.constant 0 : index
    %c0_6 = arith.constant 0 : index
    %19 = vector.load %arg3[%c0_5, %c0_6] : memref<1x32xf32, #tpu.memory_space<vmem>>, vector<1x32xf32>
    %20 = vector.broadcast %19 : vector<1x32xf32> to vector<64x32xf32>
    %21 = arith.addf %18, %20 : vector<64x32xf32>
    %c0_7 = arith.constant 0 : index
    %c0_8 = arith.constant 0 : index
    %22 = vector.load %arg4[%c0_7, %c0_8] : memref<64x32xf32, #tpu.memory_space<vmem>>, vector<64x32xf32>
    tpu.vector_store %arg4[%c0_7, %c0_8], %21 {strides = array<i32>} : memref<64x32xf32, #tpu.memory_space<vmem>>, vector<64x32xf32>,
    return
  }
  func.func @transform_0(%arg0: i32) -> (i32, i32) {
    %c0_i32 = arith.constant 0 : i32
    %c0_i32_0 = arith.constant 0 : i32
    return %arg0, %c0_i32 : i32, i32
  }
  func.func @transform_1(%arg0: i32) -> (i32, i32) {
    %c0_i32 = arith.constant 0 : i32
    %c0_i32_0 = arith.constant 0 : i32
    %c0_i32_1 = arith.constant 0 : i32
    return %c0_i32, %c0_i32_0 : i32, i32
  }
  func.func @transform_2(%arg0: i32) -> (i32, i32) {
    %c0_i32 = arith.constant 0 : i32
    %c0_i32_0 = arith.constant 0 : i32
    %c0_i32_1 = arith.constant 0 : i32
    return %c0_i32, %c0_i32_0 : i32, i32
  }
  func.func @transform_3(%arg0: i32) -> (i32, i32) {
    %c0_i32 = arith.constant 0 : i32
    %c0_i32_0 = arith.constant 0 : i32
    return %arg0, %c0_i32 : i32, i32
  }
}

</mosaic_0001>

<bundles_post_ra>
// kernel: tpu_custom_call.1
= control target key start
LH: loop header
LB: loop body
LE: loop exit
PB: predicated region body
PF: predicated region fallthrough
CT: control target
= control target key end

     0   :  { %s621_s12 = smov 0   ;;  %s764_s0 = inlined_call_operand.vmem [shape: f32[128,16], index: 0, kind: input, shape index: {}]   ;;  %s765_s1 = inlined_call_operand.vmem [shape: bf16[64,32], index: 1, kind: input, shape index: {}]   ;;  %s766_s2 = inlined_call_operand.vmem [shape: f32[1,32], index: 2, kind: input, shape index: {}]   ;;  %s767_s3 = inlined_call_operand.vmem [shape: f32[128,32], index: 3, kind: output, shape index: {}]  }
   0x1 LB: > { %s507_s13 = sadd.s32 4294967295, %s596_s12   ;;  %p511_p0 = scmp.ge.s32.totalorder %s596_s12, 1  ;;  %s596_s12 = sphi %s621_s12, %s13_s12  }
   0x2   : > { %p138_p1 = scmp.lt.s32.totalorder %s596_s12, 3 }
   0x4   : > { %p139_p2 = pnand %p511_p0, %p138_p1 }
   0x5   : > { %s512_s14 = sshll.u32 (!%p139_p2), %s507_s13, 3  ;;  %s598_s23 = smov (!%p139_p2), 16  }
   0x6   : > { %142 = sbr.rel (%p139_p2) target bundleno = 376 (0x178), region = 32  ;;  %p163_p3 = scmp.lt.s32.totalorder (!%p139_p2), %s512_s14, 15 }
   0x7   : > { %s599_s28 = smov (!%p139_p2), 32   ;;  %s600_s29 = smov (!%p139_p2), 48  }
   0xb   : > { %s769_s14 = smov (!%p163_p3, %s512_s14), 15  ;;  %v570_v9 = vld [vmem:[%s765_s1 + $0x18] sm:$0xff]   ;;  %v571_v22 = vld [vmem:[%s765_s1 + $0x10] sm:$0xff]   ;;  %v572_v40 = vld [vmem:[%s765_s1 + $0x8] sm:$0xff]   ;;  %vm299_vm0 = vcmask 130048   ;;  %vm312_vm1 = vcmask 261120  }
   0xc   : > { %s513_s15 = sshll.u32 %s769_s14, 3  ;;  %535 = vmatprep.subr.bf16.mxu0 %v570_v9  ;;  %551 = vmatprep.subr.bf16.mxu1 %v570_v9  ;;  %v573_v56 = vld [vmem:[%s765_s1] sm:$0xff]   ;;  %vm321_vm2 = vcmask 392192   ;;  %vm369_vm3 = vcmask 523264  }
   0xd   : > { %s166_s18 = scalar_lea.vmem %s764_s0, %s513_s15  ;;  %536 = vmatpush3.bf16.msra.mxu0 %v570_v9  ;;  %555 = vmatpush3.bf16.msra.mxu1 %v570_v9  ;;  %s172_s7 = scalar_lea.vmem %s767_s3, %s513_s15 }
   0xe   : > { %v177_v0 = vld [vmem:[%s166_s18 + $0x10] sm:$0xff]  ;;  %v178_v1 = vld [vmem:[%s166_s18 + $0x18] sm:$0xff]  ;;  %v175_v2 = vld [vmem:[%s166_s18] sm:$0xff]  ;;  %537 = vmatprep.subr.bf16.mxu0 %v571_v22  ;;  %552 = vmatprep.subr.bf16.mxu1 %v571_v22 }
   0xf   : > { %574 = vtanh.f32 %v177_v0  ;;  %v176_v3 = vld [vmem:[%s166_s18 + $0x8] sm:$0xff]  ;;  %v181_v4 = vld [vmem:[%s166_s18 + $0x30] sm:$0xff]  ;;  %v182_v5 = vld [vmem:[%s166_s18 + $0x38] sm:$0xff] }
  0x10   : > { %576 = vtanh.f32 %v178_v1  ;;  %v179_v6 = vld [vmem:[%s166_s18 + $0x20] sm:$0xff]  ;;  %v180_v7 = vld [vmem:[%s166_s18 + $0x28] sm:$0xff] }
  0x11   : > { %578 = vtanh.f32 %v175_v2  ;;  %538 = vmatpush3.bf16.msra.mxu0 %v571_v22  ;;  %556 = vmatpush3.bf16.msra.mxu1 %v571_v22 }
  0x12   : > { %580 = vtanh.f32 %v176_v3  ;;  %539 = vmatprep.subr.bf16.mxu0 %v572_v40  ;;  %553 = vmatprep.subr.bf16.mxu1 %v572_v40 }
  0x13   : > { %582 = vtanh.f32 %v181_v4 }
  0x14   : > { %584 = vtanh.f32 %v182_v5 }
  0x15   : > { %586 = vtanh.f32 %v179_v6  ;;  %540 = vmatpush3.bf16.msra.mxu0 %v572_v40  ;;  %557 = vmatpush3.bf16.msra.mxu1 %v572_v40 }
  0x16   : > { %588 = vtanh.f32 %v180_v7  ;;  %541 = vmatprep.subr.bf16.mxu0 %v573_v56  ;;  %554 = vmatprep.subr.bf16.mxu1 %v573_v56 }
  0x19   : > { %542 = vmatpush3.bf16.msra.mxu0 %v573_v56  ;;  %558 = vmatpush3.bf16.msra.mxu1 %v573_v56 }
  0x1c   : > { %v637_v8 = vpop.eup %574 }
  0x1d   : > { %v642_v10 = vpop.eup %576  ;;  %v205_v11 = vmul.f32 %v637_v8, %v637_v8 }
  0x1e   : > { %v646_v12 = vpop.eup %578  ;;  %v206_v13 = vmul.f32 %v642_v10, %v642_v10  ;;  %v200_v14 = vpack.c.bf16 %v642_v10, %v637_v8 }
  0x1f   : > { %v652_v15 = vpop.eup %580  ;;  %v654_v16 = vadd.f32 1.0, %v205_v11  ;;  %v203_v17 = vmul.f32 %v646_v12, %v646_v12 }
  0x20   : > { %v658_v18 = vpop.eup %582  ;;  %v660_v19 = vadd.f32 1.0, %v206_v13  ;;  %v204_v20 = vmul.f32 %v652_v15, %v652_v15  ;;  %v199_v21 = vpack.c.bf16 %v652_v15, %v646_v12 }
  0x21   : > { %v669_v23 = vpop.eup %584  ;;  %v211_v24 = vadd.f32 1.0, %v203_v17  ;;  %v209_v25 = vmul.f32 %v658_v18, %v658_v18  ;;  %v225_v30 = vmul.f32 %v637_v8, %v654_v16 }
  0x22   : > { %v673_v26 = vpop.eup %586  ;;  %v220_v27 = vpack.c.bf16 %v660_v19, %v654_v16  ;;  %v212_v28 = vadd.f32 1.0, %v204_v20  ;;  %v210_v29 = vmul.f32 %v669_v23, %v669_v23  ;;  %v226_v35 = vmul.f32 %v642_v10, %v660_v19 }
  0x23   : > { %v681_v31 = vpop.eup %588  ;;  %v217_v32 = vadd.f32 1.0, %v209_v25  ;;  %v207_v33 = vmul.f32 %v673_v26, %v673_v26  ;;  %v223_v34 = vmul.f32 %v646_v12, %v211_v24  ;;  %v233_v49 = vadd.f32 %v637_v8, %v225_v30 }
  0x24   : > { %269 = vrot.lane.b32.xlu1 %v220_v27, %s598_s23  ;;  %v219_v36 = vpack.c.bf16 %v212_v28, %v211_v24  ;;  %v218_v37 = vadd.f32 1.0, %v210_v29  ;;  %v208_v38 = vmul.f32 %v681_v31, %v681_v31  ;;  %v224_v39 = vmul.f32 %v652_v15, %v212_v28 }
  0x25   : > { %v215_v41 = vadd.f32 1.0, %v207_v33  ;;  %v231_v42 = vadd.f32 %v646_v12, %v223_v34  ;;  %v229_v43 = vmul.f32 %v658_v18, %v217_v32  ;;  %v234_v50 = vadd.f32 %v642_v10, %v226_v35 }
  0x26   : > { %267 = vrot.lane.b32.xlu0 %v219_v36, %s598_s23  ;;  %v222_v44 = vpack.c.bf16 %v218_v37, %v217_v32  ;;  %v216_v45 = vadd.f32 1.0, %v208_v38  ;;  %v232_v46 = vadd.f32 %v652_v15, %v224_v39  ;;  %v230_v47 = vmul.f32 %v669_v23, %v218_v37 }
  0x27   : > { %v227_v48 = vmul.f32 %v673_v26, %v215_v41  ;;  %v243_v51 = vmul.f32 %v646_v12, %v231_v42  ;;  %v237_v54 = vadd.f32 %v658_v18, %v229_v43  ;;  %v240_v61 = vpack.c.bf16 %v234_v50, %v233_v49 }
  0x28   : > { %273 = vrot.lane.b32.xlu1 %v222_v44, %s598_s23  ;;  %v221_v52 = vpack.c.bf16 %v216_v45, %v215_v41  ;;  %v228_v53 = vmul.f32 %v681_v31, %v216_v45  ;;  %v238_v55 = vadd.f32 %v669_v23, %v230_v47  ;;  %v244_v58 = vmul.f32 %v652_v15, %v232_v46 }
  0x29   : > { %v235_v57 = vadd.f32 %v673_v26, %v227_v48  ;;  %v239_v60 = vpack.c.bf16 %v232_v46, %v231_v42  ;;  %v251_v63 = vadd.f32 %v243_v51, %v211_v24  ;;  %v249_v0 = vmul.f32 %v658_v18, %v237_v54 }
  0x2a   : > { %271 = vrot.lane.b32.xlu0 %v221_v52, %s598_s23  ;;  %v236_v59 = vadd.f32 %v681_v31, %v228_v53  ;;  %v242_v2 = vpack.c.bf16 %v238_v55, %v237_v54  ;;  %v250_v4 = vmul.f32 %v669_v23, %v238_v55  ;;  %v252_v5 = vadd.f32 %v244_v58, %v212_v28 }
  0x2b   : > { %v247_v62 = vmul.f32 %v673_v26, %v235_v57  ;;  %v245_v6 = vmul.f32 %v637_v8, %v233_v49  ;;  %v246_v7 = vmul.f32 %v642_v10, %v234_v50  ;;  %v202_v9 = vpack.c.bf16 %v669_v23, %v658_v18  ;;  %v516_v8 = vld [vmem:[%s766_s2] ss:$0 sm:$0xff] }
  0x2c   : > { %v241_v1 = vpack.c.bf16 %v236_v59, %v235_v57  ;;  %v248_v3 = vmul.f32 %v681_v31, %v236_v59  ;;  %v201_v17 = vpack.c.bf16 %v681_v31, %v673_v26  ;;  %v257_v20 = vadd.f32 %v249_v0, %v217_v32 }
  0x2d   : > { %v255_v11 = vadd.f32 %v247_v62, %v215_v41  ;;  %v258_v22 = vadd.f32 %v250_v4, %v218_v37  ;;  %v253_v24 = vadd.f32 %v245_v6, %v654_v16  ;;  %v259_v27 = vpack.c.bf16 %v252_v5, %v251_v63 }
  0x2e   : > { %283 = vrot.lane.b32.xlu1 %v241_v1, %s599_s28  ;;  %279 = vrot.lane.b32.xlu0 %v239_v60, %s599_s28  ;;  %v256_v13 = vadd.f32 %v248_v3, %v216_v45  ;;  %v254_v18 = vadd.f32 %v246_v7, %v660_v19 }
  0x2f   : > { %v262_v23 = vpack.c.bf16 %v258_v22, %v257_v20 }
  0x30   : > { %v261_v25 = vpack.c.bf16 %v256_v13, %v255_v11  ;;  %v260_v28 = vpack.c.bf16 %v254_v18, %v253_v24 }
  0x32   : > { %285 = vrot.lane.b32.xlu1 %v242_v2, %s599_s28  ;;  %281 = vrot.lane.b32.xlu0 %v240_v61, %s599_s28 }
  0x36   : > { %295 = vrot.lane.b32.xlu1 %v261_v25, %s600_s29  ;;  %291 = vrot.lane.b32.xlu0 %v259_v27, %s600_s29 }
  0x3a   : > { %297 = vrot.lane.b32.xlu1 %v262_v23, %s600_s29  ;;  %293 = vrot.lane.b32.xlu0 %v260_v28, %s600_s29 }
  0x96   : > { %v270_v26 = vpop.permute.xlu1 %269 }
  0x97   : > { %v305_v12 = vsel %vm299_vm0, %v200_v14, %v270_v26 }
  0x98   : > { %v268_v29 = vpop.permute.xlu0 %267 }
  0x99   : > { %v302_v19 = vsel %vm299_vm0, %v199_v21, %v268_v29 }
  0x9a   : > { %v274_v30 = vpop.permute.xlu1 %273 }
  0x9b   : > { %v311_v15 = vsel %vm299_vm0, %v202_v9, %v274_v30 }
  0x9c   : > { %v272_v31 = vpop.permute.xlu0 %271 }
  0x9d   : > { %v308_v35 = vsel %vm299_vm0, %v201_v17, %v272_v31 }
  0xa0   : > { %v284_v32 = vpop.permute.xlu1 %283  ;;  %v280_v33 = vpop.permute.xlu0 %279 }
  0xa1   : > { %v318_v36 = vsel %vm312_vm1, %v308_v35, %v284_v32  ;;  %v314_v37 = vsel %vm312_vm1, %v302_v19, %v280_v33 }
  0xa4   : > { %v286_v16 = vpop.permute.xlu1 %285  ;;  %v282_v34 = vpop.permute.xlu0 %281 }
  0xa5   : > { %v320_v21 = vsel %vm312_vm1, %v311_v15, %v286_v16  ;;  %v316_v42 = vsel %vm312_vm1, %v305_v12, %v282_v34 }
  0xa8   : > { %v296_v38 = vpop.permute.xlu1 %295  ;;  %v292_v39 = vpop.permute.xlu0 %291 }
  0xa9   : > { %v323_v40 = vsel %vm321_vm2, %v314_v37, %v292_v39  ;;  %v327_v41 = vsel %vm321_vm2, %v318_v36, %v296_v38 }
  0xaa   : > { %543 = vmatprep.mubr.msk.bf16.mxu0 %vm369_vm3, %v323_v40  ;;  %547 = vmatprep.mubr.msk.bf16.mxu1 %vm369_vm3, %v327_v41 }
  0xac   : > { %v298_v43 = vpop.permute.xlu1 %297  ;;  %v294_v44 = vpop.permute.xlu0 %293 }
  0xad   : > { %v329_v45 = vsel %vm321_vm2, %v320_v21, %v298_v43  ;;  %v325_v46 = vsel %vm321_vm2, %v316_v42, %v294_v44 }
  0xae   : > { %544 = vmatmul.mubr.msk.bf16.vlgmr.msra.gmra.mxu0 %vm369_vm3, %v325_v46  ;;  %548 = vmatmul.mubr.msk.bf16.vlgmr.msra.gmra.mxu1 %vm369_vm3, %v329_v45 }
 0x16e   : > { %v545_v10 = vpop.f32.mrf.mxu0  ;;  %v549_v14 = vpop.f32.mrf.mxu1 }
 0x16f   : > { %v421_v47 = vadd.f32 %v545_v10, %v516_v8  ;;  %v437_v48 = vadd.f32 %v549_v14, %v516_v8 }
 0x170   : > { %v412_v49 = vpop.f32.mrf.mxu0  ;;  %v428_v50 = vpop.f32.mrf.mxu1 }
 0x171   : > { %445 = vst.msk [vmem:[%s172_s7 + $0x10] sm:$0xff] %vm312_vm1, %v421_v47  ;;  %449 = vst.msk [vmem:[%s172_s7 + $0x30] sm:$0xff] %vm312_vm1, %v437_v48  ;;  %v413_v51 = vadd.f32 %v516_v8, %v412_v49  ;;  %v429_v52 = vadd.f32 %v516_v8, %v428_v50 }
 0x172   : > { %v546_v53 = vpop.f32.mrf.mxu0  ;;  %v550_v54 = vpop.f32.mrf.mxu1 }
 0x173   : > { %443 = vst.msk [vmem:[%s172_s7] sm:$0xff] %vm312_vm1, %v413_v51  ;;  %447 = vst.msk [vmem:[%s172_s7 + $0x20] sm:$0xff] %vm312_vm1, %v429_v52  ;;  %v424_v55 = vadd.f32 %v546_v53, %v516_v8  ;;  %v440_v56 = vadd.f32 %v550_v54, %v516_v8 }
 0x174   : > { %v415_v57 = vpop.f32.mrf.mxu0  ;;  %v431_v58 = vpop.f32.mrf.mxu1 }
 0x175   : > { %446 = vst.msk [vmem:[%s172_s7 + $0x18] sm:$0xff] %vm312_vm1, %v424_v55  ;;  %450 = vst.msk [vmem:[%s172_s7 + $0x38] sm:$0xff] %vm312_vm1, %v440_v56  ;;  %v416_v59 = vadd.f32 %v516_v8, %v415_v57  ;;  %v432_v60 = vadd.f32 %v516_v8, %v431_v58 }
 0x177   : > { %444 = vst.msk [vmem:[%s172_s7 + $0x8] sm:$0xff] %vm312_vm1, %v416_v59  ;;  %448 = vst.msk [vmem:[%s172_s7 + $0x28] sm:$0xff] %vm312_vm1, %v432_v60 }
 0x178 PF: > { %s13_s12 = sadd.s32 1, %s596_s12  }
 0x179   : > { %p10_p4 = scmp.ge.s32.totalorder %s13_s12, 4  }
 0x17b   :  { %12 = sbr.rel (!%p10_p4) target bundleno = 1 (0x1), region = 62 }

</bundles_post_ra>
